<compile_context>
chip_gen: v7x
topology: tpu7x:2x2x1
jax: 0.10.0
libtpu: 0.0.40
codegen_flags: <defaults>
</compile_context>

<pallas_src>
import functools

import jax
import jax.numpy as jnp
from jax.experimental import pallas as pl
from jax.experimental.pallas import tpu as pltpu


# ----------------------------- Pallas kernel ------------------------------ #
def resnet_attention_kernel(
    feat_ref,   # (Bt, S, C)   feature maps in NSC layout
    ingt_ref,   # (Bt, N)      precomputed ingredient term (attn_fc bias folded in)
    wsp_ref,    # (1, C)       fused reduce_channel * attn_fc spatial weight
    wsq_ref,    # (1, N)       squeeze_attention 1x1 conv weight
    wfc_ref,    # (C, E_pad)   final fc weight (pre-transposed, lane-padded)
    bfc_ref,    # (1, E_pad)   final fc bias (lane-padded)
    scal_ref,   # (2,) SMEM    [fused spatial bias, squeeze bias]
    out_ref,    # (Bt, E_pad)
    *,
    inv_s: float,
):
    feat = feat_ref[...]                                           # (Bt, S, C)

    # Fused reduce_channel + spatial half of attn_fc: one VPU mul + lane reduce.
    spatial = (
        jnp.sum(feat * wsp_ref[...], axis=2, keepdims=True) + scal_ref[0]
    )                                                              # (Bt, S, 1)

    # attn_fc score = spatial(s) + ingredient(n) (+ bias, already folded in).
    score = spatial + ingt_ref[...][:, None, :]                    # (Bt, S, N)

    # nn.Softmax2d: softmax over the N attention channels at each spatial s.
    m = jnp.max(score, axis=2, keepdims=True)
    e = jnp.exp(score - m)
    attn = e / jnp.sum(e, axis=2, keepdims=True)                   # (Bt, S, N)

    # squeeze_attention: 1x1 conv over the N channels -> one mask value per s.
    mask = jnp.sum(attn * wsq_ref[...], axis=2) + scal_ref[1]      # (Bt, S)

    # masked_features + AdaptiveAvgPool2d((1,1)) == (mask @ feat) / S on the MXU.
    pooled = jnp.einsum(
        "bqs,bsc->bqc", mask[:, None, :], feat,
        preferred_element_type=jnp.float32,
    )                                                              # (Bt, 1, C)
    pooled = pooled.reshape(pooled.shape[0], pooled.shape[2]) * inv_s  # (Bt, C)

    # final fc: Linear(C, E) (lane-padded to E_pad).
    out_ref[...] = (
        jnp.dot(pooled, wfc_ref[...], preferred_element_type=jnp.float32)
        + bfc_ref[...]
    )


# ------------------------------- Wrapper ----------------------------------- #
def resnet_attention_forward(features_nchw, ingds_embedding, params, *, bt_max=8):
    """features_nchw: (B, C, 8, 8) float32, ingds_embedding: (B, N, E) float32."""
    B, C, H, W = features_nchw.shape
    S = H * W
    assert S == 64, "module hardcodes resnet_outsize = 64 (8x8 spatial)"
    N, E = ingds_embedding.shape[1], ingds_embedding.shape[2]
    A = params["wr"].shape[1]
    assert A == 1, "the .view(B, A*N, 8, 8) in the module requires attn_channel == 1"

    f32 = jnp.float32

    # Glue: layout plumbing + one-time weight folding in plain JAX.
    feat = jnp.transpose(features_nchw.reshape(B, C, S), (0, 2, 1))       # (B, S, C)

    wa = params["wa"]                                                     # (1, A+E)
    war = wa[0, :A]                                                       # (A,)
    wae = wa[0, A:]                                                       # (E,)

    # Fold reduce_channel + spatial part of attn_fc: feat @ (wr @ war) + br@war.
    wsp = (params["wr"] @ war).reshape(1, C).astype(f32)                  # (1, C)
    spatial_bias = jnp.dot(params["br"], war)                             # scalar

    # Hoist the ingredient matvec (and attn_fc bias) out of the kernel.
    ingt = (
        jnp.einsum("bne,e->bn", ingds_embedding, wae) + params["ba"][0]
    ).astype(f32)                                                         # (B, N)

    wsq = params["wsq"].reshape(1, N).astype(f32)                         # (1, N)
    bsq = params["bsq"][0]
    scal = jnp.stack([spatial_bias, bsq]).astype(f32)                     # (2,) SMEM

    # Pad E to lane width so the final matmul / output store are unmasked.
    E_pad = ((E + 127) // 128) * 128
    wfc_t = jnp.zeros((C, E_pad), f32).at[:, :E].set(params["wfc"].T)
    bfc = jnp.zeros((1, E_pad), f32).at[:, :E].set(params["bfc"].reshape(1, E))

    # Batch tiling: Bt samples per grid step, pad B up to a multiple of Bt.
    Bt = min(bt_max, B)
    n_blk = -(-B // Bt)
    B_pad = n_blk * Bt
    if B_pad != B:
        feat = jnp.pad(feat, ((0, B_pad - B), (0, 0), (0, 0)))
        ingt = jnp.pad(ingt, ((0, B_pad - B), (0, 0)))

    kernel = functools.partial(resnet_attention_kernel, inv_s=1.0 / S)

    out = pl.pallas_call(
        kernel,
        out_shape=jax.ShapeDtypeStruct((B_pad, E_pad), f32),
        grid=(n_blk,),
        in_specs=[
            pl.BlockSpec((Bt, S, C), lambda b: (b, 0, 0)),
            pl.BlockSpec((Bt, N), lambda b: (b, 0)),
            pl.BlockSpec((1, C), lambda b: (0, 0)),
            pl.BlockSpec((1, N), lambda b: (0, 0)),
            pl.BlockSpec((C, E_pad), lambda b: (0, 0)),
            pl.BlockSpec((1, E_pad), lambda b: (0, 0)),
            pl.BlockSpec(memory_space=pltpu.MemorySpace.SMEM),
        ],
        out_specs=pl.BlockSpec((Bt, E_pad), lambda b: (b, 0)),
        compiler_params=pltpu.CompilerParams(
            dimension_semantics=("parallel",),
        ),
    )(feat, ingt, wsp, wsq, wfc_t, bfc, scal)

    return out[:B, :E]


# ------------------------- Pure-JAX reference ------------------------------ #
def reference_forward(features_nchw, ingds_embedding, params):
    B, C, H, W = features_nchw.shape
    S = H * W
    A = params["wr"].shape[1]
    feat_sc = jnp.transpose(features_nchw.reshape(B, C, S), (0, 2, 1))      # (B, S, C)
    red = jnp.einsum("bsc,ca->bsa", feat_sc, params["wr"]) + params["br"]   # (B, S, A)
    wa, ba = params["wa"], params["ba"]
    spatial = jnp.einsum("bsa,a->bs", red, wa[0, :A])                        # (B, S)
    ingt = jnp.einsum("bne,e->bn", ingds_embedding, wa[0, A:])               # (B, N)
    score = ingt[:, :, None] + spatial[:, None, :] + ba[0]                   # (B, N, S)
    attn = jax.nn.softmax(score, axis=1)            # Softmax2d over channels
    mask = jnp.einsum("bns,n->bs", attn, params["wsq"]) + params["bsq"]      # (B, S)
    pooled = jnp.mean(
        mask[:, None, :] * features_nchw.reshape(B, C, S), axis=2
    )                                                                        # (B, C)
    return pooled @ params["wfc"].T + params["bfc"]                          # (B, E)


# --------------------------------- Main ------------------------------------ #
if __name__ == "__main__":
    # Small shapes consistent with the module (resnet channel count scaled down).
    B = 2          # batch
    C = 256        # resnet_out_channel (2048 in the real module, scaled down)
    H = W = 8      # layer4 spatial size -> resnet_outsize = 64
    N = 16         # n_ingd
    E = 50         # ingd_embedsize
    A = 1          # attn_channel

    key = jax.random.PRNGKey(0)
    ks = jax.random.split(key, 10)

    features = jax.random.normal(ks[0], (B, C, H, W), dtype=jnp.float32)
    ingds = jax.random.normal(ks[1], (B, N, E), dtype=jnp.float32)

    params = {
        # reduce_channel = Conv2d(C, A, 1x1): weight (A, C, 1, 1) -> (C, A)
        "wr": 0.05 * jax.random.normal(ks[2], (C, A), dtype=jnp.float32),
        "br": 0.01 * jax.random.normal(ks[3], (A,), dtype=jnp.float32),
        # attn_fc = Linear(A + E, 1): weight (1, A + E), bias (1,)
        "wa": 0.05 * jax.random.normal(ks[4], (1, A + E), dtype=jnp.float32),
        "ba": 0.01 * jax.random.normal(ks[5], (1,), dtype=jnp.float32),
        # squeeze_attention = Conv2d(N * A, 1, 1x1): weight (1, N*A, 1, 1) -> (N,)
        "wsq": 0.05 * jax.random.normal(ks[6], (N * A,), dtype=jnp.float32),
        "bsq": 0.01 * jax.random.normal(ks[7], (1,), dtype=jnp.float32),
        # fc = Linear(C, E): weight (E, C), bias (E,)
        "wfc": 0.05 * jax.random.normal(ks[8], (E, C), dtype=jnp.float32),
        "bfc": 0.01 * jax.random.normal(ks[9], (E,), dtype=jnp.float32),
    }

    out = resnet_attention_forward(features, ingds, params)
    out = jax.block_until_ready(out)

    ref = reference_forward(features, ingds, params)
    assert out.shape == (B, E), out.shape
    assert jnp.allclose(out, ref, rtol=1e-4, atol=1e-4), (
        float(jnp.max(jnp.abs(out - ref)))
    )

    print("KERNEL_OK")
</pallas_src>

<mosaic_0001>
module attributes {stable_mosaic.version = 11 : i64} {
  func.func @resnet_attention_kernel(%arg0: i32, %arg1: memref<2x64x256xf32, #tpu.memory_space<vmem>>, %arg2: memref<2x16xf32, #tpu.memory_space<vmem>>, %arg3: memref<1x256xf32, #tpu.memory_space<vmem>>, %arg4: memref<1x16xf32, #tpu.memory_space<vmem>>, %arg5: memref<256x128xf32, #tpu.memory_space<vmem>>, %arg6: memref<1x128xf32, #tpu.memory_space<vmem>>, %arg7: memref<2xf32, #tpu.memory_space<smem>>, %arg8: memref<2x128xf32, #tpu.memory_space<vmem>>) attributes {dimension_semantics = [#tpu.dimension_semantics<parallel>], iteration_bounds = array<i64: 1>, scalar_prefetch = 0 : i64, scratch_operands = 0 : i64, tpu.core_type = #tpu.core_type<tc>, window_params = [{transform_indices = @transform_0, window_bounds = array<i64: 2, 64, 256>}, {transform_indices = @transform_1, window_bounds = array<i64: 2, 16>}, {pipeline_mode = #tpu.pipeline_mode<synchronous>, transform_indices = @transform_2, window_bounds = array<i64: 1, 256>}, {pipeline_mode = #tpu.pipeline_mode<synchronous>, transform_indices = @transform_3, window_bounds = array<i64: 1, 16>}, {pipeline_mode = #tpu.pipeline_mode<synchronous>, transform_indices = @transform_4, window_bounds = array<i64: 256, 128>}, {pipeline_mode = #tpu.pipeline_mode<synchronous>, transform_indices = @transform_5, window_bounds = array<i64: 1, 128>}, {transform_indices = @transform_6, window_bounds = array<i64: 2>}, {transform_indices = @transform_7, window_bounds = array<i64: 2, 128>}]} {
    %c0 = arith.constant 0 : index
    %c0_0 = arith.constant 0 : index
    %c0_1 = arith.constant 0 : index
    %0 = vector.load %arg1[%c0, %c0_0, %c0_1] : memref<2x64x256xf32, #tpu.memory_space<vmem>>, vector<2x64x256xf32>
    %c0_2 = arith.constant 0 : index
    %c0_3 = arith.constant 0 : index
    %1 = vector.load %arg3[%c0_2, %c0_3] : memref<1x256xf32, #tpu.memory_space<vmem>>, vector<1x256xf32>
    %2 = vector.shape_cast %1 : vector<1x256xf32> to vector<1x1x256xf32>
    %3 = vector.broadcast %2 : vector<1x1x256xf32> to vector<2x64x256xf32>
    %4 = arith.mulf %0, %3 : vector<2x64x256xf32>
    %cst = arith.constant dense<0.000000e+00> : vector<2x64xf32>
    %5 = vector.multi_reduction <add>, %4, %cst [2] : vector<2x64x256xf32> to vector<2x64xf32>
    %6 = vector.shape_cast %5 : vector<2x64xf32> to vector<2x64x1xf32>
    %c0_4 = arith.constant 0 : index
    %7 = memref.load %arg7[%c0_4] : memref<2xf32, #tpu.memory_space<smem>>
    %8 = vector.broadcast %7 : f32 to vector<2x64x1xf32>
    %9 = arith.addf %6, %8 : vector<2x64x1xf32>
    %c0_5 = arith.constant 0 : index
    %c0_6 = arith.constant 0 : index
    %10 = vector.load %arg2[%c0_5, %c0_6] : memref<2x16xf32, #tpu.memory_space<vmem>>, vector<2x16xf32>
    %11 = vector.shape_cast %10 : vector<2x16xf32> to vector<2x1x16xf32>
    %12 = vector.broadcast %9 : vector<2x64x1xf32> to vector<2x64x16xf32>
    %13 = vector.broadcast %11 : vector<2x1x16xf32> to vector<2x64x16xf32>
    %14 = arith.addf %12, %13 : vector<2x64x16xf32>
    %cst_7 = arith.constant dense<0xFF800000> : vector<2x64xf32>
    %15 = vector.multi_reduction <maximumf>, %14, %cst_7 [2] : vector<2x64x16xf32> to vector<2x64xf32>
    %16 = vector.shape_cast %15 : vector<2x64xf32> to vector<2x64x1xf32>
    %17 = vector.broadcast %16 : vector<2x64x1xf32> to vector<2x64x16xf32>
    %18 = arith.subf %14, %17 : vector<2x64x16xf32>
    %19 = math.exp %18 : vector<2x64x16xf32>
    %cst_8 = arith.constant dense<0.000000e+00> : vector<2x64xf32>
    %20 = vector.multi_reduction <add>, %19, %cst_8 [2] : vector<2x64x16xf32> to vector<2x64xf32>
    %21 = vector.shape_cast %20 : vector<2x64xf32> to vector<2x64x1xf32>
    %22 = vector.broadcast %21 : vector<2x64x1xf32> to vector<2x64x16xf32>
    %23 = arith.divf %19, %22 : vector<2x64x16xf32>
    %c0_9 = arith.constant 0 : index
    %c0_10 = arith.constant 0 : index
    %24 = vector.load %arg4[%c0_9, %c0_10] : memref<1x16xf32, #tpu.memory_space<vmem>>, vector<1x16xf32>
    %25 = vector.shape_cast %24 : vector<1x16xf32> to vector<1x1x16xf32>
    %26 = vector.broadcast %25 : vector<1x1x16xf32> to vector<2x64x16xf32>
    %27 = arith.mulf %23, %26 : vector<2x64x16xf32>
    %cst_11 = arith.constant dense<0.000000e+00> : vector<2x64xf32>
    %28 = vector.multi_reduction <add>, %27, %cst_11 [2] : vector<2x64x16xf32> to vector<2x64xf32>
    %c1 = arith.constant 1 : index
    %29 = memref.load %arg7[%c1] : memref<2xf32, #tpu.memory_space<smem>>
    %30 = vector.broadcast %29 : f32 to vector<2x64xf32>
    %31 = arith.addf %28, %30 : vector<2x64xf32>
    %32 = vector.shape_cast %31 : vector<2x64xf32> to vector<2x1x64xf32>
    "tpu.trace_start"() <{level = 10 : i32, message = "bqs,bsc->bqc"}> : () -> ()
    %cst_12 = arith.constant dense<0.000000e+00> : vector<2x1x256xf32>
    %33 = tpu.matmul %32, %0, %cst_12 {dimension_numbers = #tpu.dot_dimension_numbers<[2], [1], [1], [2], [0, 0, 0, 1, 1, 2], [0], [0]>} : vector<2x1x64xf32>, vector<2x64x256xf32>, vector<2x1x256xf32> -> vector<2x1x256xf32>
    "tpu.trace_stop"() : () -> ()
    %34 = vector.shape_cast %33 : vector<2x1x256xf32> to vector<2x256xf32>
    %cst_13 = arith.constant 1.562500e-02 : f32
    %35 = vector.broadcast %cst_13 : f32 to vector<2x256xf32>
    %36 = arith.mulf %34, %35 : vector<2x256xf32>
    %c0_14 = arith.constant 0 : index
    %c0_15 = arith.constant 0 : index
    %37 = vector.load %arg5[%c0_14, %c0_15] : memref<256x128xf32, #tpu.memory_space<vmem>>, vector<256x128xf32>
    %cst_16 = arith.constant dense<0.000000e+00> : vector<2x128xf32>
    %38 = tpu.matmul %36, %37, %cst_16 {dimension_numbers = #tpu.dot_dimension_numbers<[1], [0], [0], [1], [0, 0, 1, 1], [], []>} : vector<2x256xf32>, vector<256x128xf32>, vector<2x128xf32> -> vector<2x128xf32>
    %c0_17 = arith.constant 0 : index
    %c0_18 = arith.constant 0 : index
    %39 = vector.load %arg6[%c0_17, %c0_18] : memref<1x128xf32, #tpu.memory_space<vmem>>, vector<1x128xf32>
    %40 = vector.broadcast %39 : vector<1x128xf32> to vector<2x128xf32>
    %41 = arith.addf %38, %40 : vector<2x128xf32>
    %c0_19 = arith.constant 0 : index
    %c0_20 = arith.constant 0 : index
    %42 = vector.load %arg8[%c0_19, %c0_20] : memref<2x128xf32, #tpu.memory_space<vmem>>, vector<2x128xf32>
    tpu.vector_store %arg8[%c0_19, %c0_20], %41 {strides = array<i32>} : memref<2x128xf32, #tpu.memory_space<vmem>>, vector<2x128xf32>,
    return
  }
  func.func @transform_0(%arg0: i32) -> (i32, i32, i32) {
    %c0_i32 = arith.constant 0 : i32
    %c0_i32_0 = arith.constant 0 : i32
    %c0_i32_1 = arith.constant 0 : i32
    return %arg0, %c0_i32, %c0_i32_0 : i32, i32, i32
  }
  func.func @transform_1(%arg0: i32) -> (i32, i32) {
    %c0_i32 = arith.constant 0 : i32
    %c0_i32_0 = arith.constant 0 : i32
    return %arg0, %c0_i32 : i32, i32
  }
  func.func @transform_2(%arg0: i32) -> (i32, i32) {
    %c0_i32 = arith.constant 0 : i32
    %c0_i32_0 = arith.constant 0 : i32
    %c0_i32_1 = arith.constant 0 : i32
    return %c0_i32, %c0_i32_0 : i32, i32
  }
  func.func @transform_3(%arg0: i32) -> (i32, i32) {
    %c0_i32 = arith.constant 0 : i32
    %c0_i32_0 = arith.constant 0 : i32
    %c0_i32_1 = arith.constant 0 : i32
    return %c0_i32, %c0_i32_0 : i32, i32
  }
  func.func @transform_4(%arg0: i32) -> (i32, i32) {
    %c0_i32 = arith.constant 0 : i32
    %c0_i32_0 = arith.constant 0 : i32
    %c0_i32_1 = arith.constant 0 : i32
    return %c0_i32, %c0_i32_0 : i32, i32
  }
  func.func @transform_5(%arg0: i32) -> (i32, i32) {
    %c0_i32 = arith.constant 0 : i32
    %c0_i32_0 = arith.constant 0 : i32
    %c0_i32_1 = arith.constant 0 : i32
    return %c0_i32, %c0_i32_0 : i32, i32
  }
  func.func @transform_6(%arg0: i32) -> i32 {
    %c0_i32 = arith.constant 0 : i32
    %c0_i32_0 = arith.constant 0 : i32
    return %c0_i32 : i32
  }
  func.func @transform_7(%arg0: i32) -> (i32, i32) {
    %c0_i32 = arith.constant 0 : i32
    %c0_i32_0 = arith.constant 0 : i32
    return %arg0, %c0_i32 : i32, i32
  }
}

</mosaic_0001>

<bundles_post_ra>
// kernel: tpu_custom_call.1
= control target key start
LH: loop header
LB: loop body
LE: loop exit
PB: predicated region body
PF: predicated region fallthrough
CT: control target
= control target key end

     0   :  { %12 = vsyncpa [#allocation3], 0  ;;  %s1763_s0 = inlined_call_operand.hbm [shape: f32[2,64,256], index: 0, kind: input, shape index: {}]   ;;  %s1764_s1 = inlined_call_operand.vmem [shape: f32[2,16], index: 1, kind: input, shape index: {}]   ;;  %s1765_s2 = inlined_call_operand.vmem [shape: f32[1,256], index: 2, kind: input, shape index: {}]   ;;  %s1766_s3 = inlined_call_operand.vmem [shape: f32[1,16], index: 3, kind: input, shape index: {}]   ;;  %s1767_s4 = inlined_call_operand.hbm [shape: f32[256,128], index: 4, kind: input, shape index: {}]   ;;  %s1768_s5 = inlined_call_operand.vmem [shape: f32[1,128], index: 5, kind: input, shape index: {}]   ;;  %s1769_s6 = inlined_call_operand.vmem [shape: f32[2], index: 6, kind: input, shape index: {}]   ;;  %s1770_s7 = inlined_call_operand.hbm [shape: f32[2,128], index: 7, kind: output, shape index: {}]  }
   0x1   :  { %13 = vsyncpa [#allocation7], 0 }
   0x2   :  { %14 = vsyncpa [#allocation5], 0 }
   0x3   :  { %15 = vsyncpa [#allocation4], 0  ;;  %s1190_s24 = smov [#allocation2]   ;;  %s1104_s28 = scalar_lea.hbm %s1763_s0, 4096 }
   0x4   :  { %s21_s25 = sshll.u32 %s1190_s24, 4  ;;  %p1105_p0 = scmp.ne.s32.totalorder %s1763_s0, %s1104_s28  ;;  %s22_s25 = int_to_ptr.vmem [resolvable:$true] %s21_s25 }
   0x5   :  { %p1108_p1 = scmp.lt.u32.totalorder %s1104_s28, %s1763_s0 }
   0x7   :  { %p1110_p2 = pnand %p1108_p1, %p1105_p0 }
   0x9   :  { %1113 = shalt.err (!%p1110_p2)
}
   0xa   :  { %s1114_s10 = scalar_lea.vmem %s22_s25, 4096  ;;  %p1119_p4 = scmp.lt.s32.totalorder %s22_s25, %s22_s25 }
   0xb   :  { %p1115_p3 = scmp.ne.s32.totalorder %s22_s25, %s1114_s10  ;;  %p1120_p5 = scmp.lt.s32.totalorder %s1114_s10, %s1114_s10 }
   0xd   :  { %p1121_p6 = por %p1120_p5, %p1119_p4 }
   0xf   :  { %p1122_p7 = pnand %p1121_p6, %p1115_p3 }
  0x11   :  { %1125 = shalt.err (!%p1122_p7)
}
  0x12   :  { %s1191_s11 = smov 256   ;;  %s1192_s12 = smov 16  }
  0x13   :  { %27 = dma.hbm_to_vmem [thread:$0]  %s1763_s0, 4096, %s22_s25, [#allocation3], %s1191_s11, %s1191_s11, %s1192_s12  }
  0x14   :  { %s1193_s15 = smov [#allocation6]   ;;  %s1126_s19 = scalar_lea.hbm %s1767_s4, 4096 }
  0x15   :  { %s39_s16 = sshll.u32 %s1193_s15, 4  ;;  %p1127_p8 = scmp.ne.s32.totalorder %s1767_s4, %s1126_s19  ;;  %s40_s16 = int_to_ptr.vmem [resolvable:$true] %s39_s16 }
  0x16   :  { %p1130_p9 = scmp.lt.u32.totalorder %s1126_s19, %s1767_s4 }
  0x18   :  { %p1132_p10 = pnand %p1130_p9, %p1127_p8 }
  0x1a   :  { %1135 = shalt.err (!%p1132_p10)
}
  0x1b   :  { %s1136_s24 = scalar_lea.vmem %s40_s16, 4096  ;;  %p1141_p12 = scmp.lt.s32.totalorder %s40_s16, %s40_s16 }
  0x1c   :  { %p1137_p11 = scmp.ne.s32.totalorder %s40_s16, %s1136_s24  ;;  %p1142_p13 = scmp.lt.s32.totalorder %s1136_s24, %s1136_s24 }
  0x1e   :  { %p1143_p0 = por %p1142_p13, %p1141_p12 }
  0x20   :  { %p1144_p1 = pnand %p1143_p0, %p1137_p11 }
  0x22   :  { %1147 = shalt.err (!%p1144_p1)
}
  0x23   :  { %s1194_s0 = smov 128   ;;  %s1195_s25 = smov 8  }
  0x24   :  { %45 = dma.hbm_to_vmem [thread:$0]  %s1767_s4, 4096, %s40_s16, [#allocation7], %s1194_s0, %s1194_s0, %s1195_s25  }
  0x25   :  { %s54_s30 = sshll.u32 %s1769_s6, 4  ;;  %s55_s30 = int_to_ptr.vmem [resolvable:$true] %s54_s30 }
  0x26   :  { %s1148_s8 = scalar_lea.vmem %s55_s30, 16  ;;  %p1153_p3 = scmp.lt.s32.totalorder %s55_s30, %s55_s30 }
  0x27   :  { %p1149_p2 = scmp.ne.s32.totalorder %s55_s30, %s1148_s8  ;;  %p1154_p4 = scmp.lt.s32.totalorder %s1148_s8, %s1148_s8 }
  0x29   :  { %p1155_p5 = por %p1154_p4, %p1153_p3 }
  0x2b   :  { %p1156_p6 = pnand %p1155_p5, %p1149_p2 }
  0x2d   :  { %1159 = shalt.err (!%p1156_p6)
}
  0x2e   :  { %s1196_s9 = smov [#allocation8]  }
  0x2f   :  { %57 = dma.vmem_to_smem %s55_s30, 16, %s1196_s9, [#allocation5]  }
  0x30   :  { %1182 = dma.done.wait [#allocation3], 4096  }
  0x31   :  { %1183 = vsyncadd [#allocation3], 4294963200 }
  0x32   :  { %1184 = dma.done.wait [#allocation7], 4096  }
  0x33   :  { %1185 = vsyncadd [#allocation7], 4294963200 }
  0x34   :  { %1186 = dma.done.wait [#allocation5], 16  }
  0x35   :  { %1187 = vsyncadd [#allocation5], 4294967280 }
  0x36   :  { %67 = sfence }
  0x37   :  { %v1771_v0 = vlaneseq  ;;  %v1270_v2 = vld [vmem:[#allocation2] sm:$0xff]  ;;  %v1275_v4 = vld [vmem:[#allocation2 + $0x8] sm:$0xff]  ;;  %v1285_v9 = vld [vmem:[#allocation2 + $0x10] sm:$0xff]  ;;  %vm260_vm0 = vcmask 130048   ;;  %vm545_vm1 = vcmask 130112   ;;  %vm552_vm2 = vcmask 195712  }
  0x38   :  { %v100_v3 = vld [vmem:[%s1765_s2] sm:$0x3]  ;;  %v1283_v8 = vld [vmem:[#allocation2 + $0x28] sm:$0xff]  ;;  %v1287_v10 = vld [vmem:[#allocation2 + $0x18] sm:$0xff]  ;;  %s192_s2 = sld [smem:[#allocation8]]  ;;  %vm559_vm3 = vcmask 261312  }
  0x39   :  { %v1268_v1 = vshrl.u32 %v1771_v0, 7  ;;  %v1281_v7 = vld [vmem:[#allocation2 + $0x20] sm:$0xff]  ;;  %v1289_v11 = vld [vmem:[#allocation2 + $0x30] sm:$0xff]  ;;  %v1296_v14 = vld [vmem:[#allocation2 + $0x38] sm:$0xff]  ;;  %vm566_vm4 = vcmask 326912   ;;  %vm573_vm5 = vcmask 392512  }
  0x3a   :  { %v1298_v15 = vld [vmem:[#allocation2 + $0x80] sm:$0xff]  ;;  %v1300_v16 = vld [vmem:[#allocation2 + $0x90] sm:$0xff]  ;;  %v1314_v23 = vld [vmem:[#allocation2 + $0x48] sm:$0xff]  ;;  %vm580_vm6 = vcmask 458112   ;;  %vm587_vm7 = vcmask 523712   ;;  %vm589_vm8 = vcmask 523264  }
  0x3b   :  { %v1278_v5 = vsub.s32 0, %v1268_v1  ;;  %v108_v6 = vsub.s32 1, %v1268_v1  ;;  %v1312_v22 = vld [vmem:[#allocation2 + $0x40] sm:$0xff]  ;;  %v1324_v28 = vld [vmem:[#allocation2 + $0x50] sm:$0xff]  ;;  %v1326_v29 = vld [vmem:[#allocation2 + $0x58] sm:$0xff]  ;;  %vm831_vm9 = vcmask 1041409  }
  0x3c   :  { %v1336_v38 = vld [vmem:[#allocation2 + $0x60] sm:$0xff]  ;;  %v1338_v39 = vld [vmem:[#allocation2 + $0x68] sm:$0xff]  ;;  %v1340_v40 = vld [vmem:[#allocation2 + $0x70] sm:$0xff]  ;;  %s1199_s15 = smov [#allocation9]  }
  0x3d   :  { %v1292_v12 = vrot.slane %v100_v3, %v1278_v5  ;;  %v1294_v13 = vrot.slane %v100_v3, %v108_v6  ;;  %v1342_v41 = vld [vmem:[#allocation2 + $0x78] sm:$0xff]  ;;  %v1352_v48 = vld [vmem:[#allocation2 + $0x88] sm:$0xff]  ;;  %v1354_v49 = vld [vmem:[#allocation2 + $0xa0] sm:$0xff]  ;;  %s914_s16 = sshll.u32 %s1199_s15, 4  ;;  %s915_s16 = int_to_ptr.vmem [resolvable:$true] %s914_s16 }
  0x3e   :  { %v1356_v50 = vld [vmem:[#allocation2 + $0xb0] sm:$0xff]  ;;  %v1358_v51 = vld [vmem:[#allocation2 + $0x98] sm:$0xff]  ;;  %v1362_v53 = vld [vmem:[#allocation2 + $0xc0] sm:$0xff]  ;;  %s1160_s17 = scalar_lea.vmem %s915_s16, 32  ;;  %p1165_p8 = scmp.lt.s32.totalorder %s915_s16, %s915_s16 }
  0x3f   :  { %v112_v18 = vmul.f32 %v1292_v12, %v1270_v2  ;;  %v113_v19 = vmul.f32 %v1294_v13, %v1275_v4  ;;  %v116_v20 = vmul.f32 %v1292_v12, %v1281_v7  ;;  %v117_v21 = vmul.f32 %v1294_v13, %v1283_v8  ;;  %v1364_v54 = vld [vmem:[#allocation2 + $0xd0] sm:$0xff]  ;;  %v1374_v60 = vld [vmem:[#allocation2 + $0xe0] sm:$0xff]  ;;  %v1380_v3 = vld [vmem:[#allocation2 + $0xa8] sm:$0xff]  ;;  %p1161_p7 = scmp.ne.s32.totalorder %s915_s16, %s1160_s17  ;;  %p1166_p9 = scmp.lt.s32.totalorder %s1160_s17, %s1160_s17 }
  0x40   :  { %v114_v24 = vmul.f32 %v1292_v12, %v1285_v9  ;;  %v115_v25 = vmul.f32 %v1294_v13, %v1287_v10  ;;  %v118_v26 = vmul.f32 %v1292_v12, %v1289_v11  ;;  %v119_v27 = vmul.f32 %v1294_v13, %v1296_v14  ;;  %v1376_v61 = vld [vmem:[#allocation2 + $0xf0] sm:$0xff] }
  0x41   :  { %v144_v30 = vadd.f32 %v113_v19, %v112_v18  ;;  %v150_v31 = vadd.f32 %v117_v21, %v116_v20  ;;  %v120_v33 = vmul.f32 %v1292_v12, %v1312_v22  ;;  %v121_v34 = vmul.f32 %v1294_v13, %v1314_v23  ;;  %v1384_v18 = vld [vmem:[#allocation2 + $0xb8] sm:$0xff]  ;;  %p1167_p10 = por %p1166_p9, %p1165_p8 }
  0x42   :  { %v147_v32 = vadd.f32 %v115_v25, %v114_v24  ;;  %v153_v35 = vadd.f32 %v119_v27, %v118_v26  ;;  %v122_v36 = vmul.f32 %v1292_v12, %v1324_v28  ;;  %v123_v37 = vmul.f32 %v1294_v13, %v1326_v29  ;;  %v1394_v27 = vld [vmem:[#allocation2 + $0xc8] sm:$0xff] }
  0x43   :  { %145 = vadd.xlane.f32.xlu0 %v144_v30  ;;  %151 = vadd.xlane.f32.xlu1 %v150_v31  ;;  %v156_v42 = vadd.f32 %v121_v34, %v120_v33  ;;  %v124_v43 = vmul.f32 %v1292_v12, %v1336_v38  ;;  %v125_v44 = vmul.f32 %v1294_v13, %v1338_v39  ;;  %v1396_v30 = vld [vmem:[#allocation2 + $0xd8] sm:$0xff]  ;;  %p1168_p11 = pnand %p1167_p10, %p1161_p7 }
  0x44   :  { %v159_v45 = vadd.f32 %v123_v37, %v122_v36  ;;  %v126_v46 = vmul.f32 %v1292_v12, %v1340_v40  ;;  %v127_v47 = vmul.f32 %v1294_v13, %v1342_v41  ;;  %v128_v57 = vmul.f32 %v1292_v12, %v1298_v15  ;;  %v1406_v37 = vld [vmem:[#allocation2 + $0xe8] sm:$0xff] }
  0x45   :  { %v162_v56 = vadd.f32 %v125_v44, %v124_v43  ;;  %v129_v58 = vmul.f32 %v1294_v13, %v1352_v48  ;;  %v130_v59 = vmul.f32 %v1292_v12, %v1300_v16  ;;  %v131_v63 = vmul.f32 %v1294_v13, %v1358_v51 }
  0x46   :  { %v165_v62 = vadd.f32 %v127_v47, %v126_v46  ;;  %v132_v19 = vmul.f32 %v1292_v12, %v1354_v49  ;;  %v133_v20 = vmul.f32 %v1294_v13, %v1380_v3  ;;  %v134_v21 = vmul.f32 %v1292_v12, %v1356_v50 }
  0x47   :  { %148 = vadd.xlane.f32.xlu0 %v147_v32  ;;  %154 = vadd.xlane.f32.xlu1 %v153_v35  ;;  %v168_v24 = vadd.f32 %v129_v58, %v128_v57  ;;  %v171_v25 = vadd.f32 %v131_v63, %v130_v59  ;;  %v135_v26 = vmul.f32 %v1294_v13, %v1384_v18  ;;  %v1197_v59 = vmov 1966171168  }
  0x48   :  { %v174_v31 = vadd.f32 %v133_v20, %v132_v19  ;;  %v136_v32 = vmul.f32 %v1292_v12, %v1362_v53  ;;  %v137_v33 = vmul.f32 %v1294_v13, %v1394_v27  ;;  %v138_v35 = vmul.f32 %v1292_v12, %v1364_v54  ;;  %v925_v20 = vld.sshfl [vmem:[%s1764_s1] sm:$0x11 pattern:$0x75316420] }
  0x49   :  { %v177_v34 = vadd.f32 %v135_v26, %v134_v21  ;;  %v139_v36 = vmul.f32 %v1294_v13, %v1396_v30  ;;  %v140_v44 = vmul.f32 %v1292_v12, %v1374_v60  ;;  %v142_v47 = vmul.f32 %v1292_v12, %v1376_v61 }
  0x4a   :  { %v180_v43 = vadd.f32 %v137_v33, %v136_v32  ;;  %v1422_v21 = vstv %s192_s2 }
  0x4b   :  { %157 = vadd.xlane.f32.xlu0 %v156_v42  ;;  %160 = vadd.xlane.f32.xlu1 %v159_v45  ;;  %v1408_v42 = vld [vmem:[#allocation2 + $0xf8] sm:$0xff]  ;;  %v141_v45 = vmul.f32 %v1294_v13, %v1406_v37  ;;  %v183_v46 = vadd.f32 %v139_v36, %v138_v35 }
  0x4d   :  { %v186_v57 = vadd.f32 %v141_v45, %v140_v44 }
  0x4f   :  { %163 = vadd.xlane.f32.xlu0 %v162_v56  ;;  %166 = vadd.xlane.f32.xlu1 %v165_v62  ;;  %v143_v56 = vmul.f32 %v1294_v13, %v1408_v42  ;;  %v221_v62 = vunpack.c.l.s4 %v1197_v59 }
  0x51   :  { %v189_v58 = vadd.f32 %v143_v56, %v142_v47  ;;  %v222_v63 = vunpack.c.0.s8 %v221_v62  ;;  %v219_v56 = vcombine.high %v925_v20, %v925_v20 }
  0x53   :  { %169 = vadd.xlane.f32.xlu0 %v168_v24  ;;  %172 = vadd.xlane.f32.xlu1 %v171_v25  ;;  %v225_v19 = vsub.s32 %v222_v63, %v1268_v1 }
  0x55   :  { %v226_v12 = vrot.slane %v925_v20, %v225_v19 }
  0x57   :  { %175 = vadd.xlane.f32.xlu0 %v174_v31  ;;  %178 = vadd.xlane.f32.xlu1 %v177_v34  ;;  %v237_v13 = vrot.slane %v226_v12, %v1278_v5 }
  0x5b   :  { %181 = vadd.xlane.f32.xlu0 %v180_v43  ;;  %184 = vadd.xlane.f32.xlu1 %v183_v46 }
  0x5f   :  { %187 = vadd.xlane.f32.xlu0 %v186_v57  ;;  %190 = vadd.xlane.f32.xlu1 %v189_v58 }
  0xd0   :  { %v146_v24 = vpop.xlane.xlu0 %145  ;;  %v152_v25 = vpop.xlane.xlu1 %151 }
  0xd1   :  { %v194_v26 = vadd.f32 %v1422_v21, %v146_v24  ;;  %v196_v31 = vadd.f32 %v1422_v21, %v152_v25 }
  0xd3   :  { %v1427_v32 = vadd.f32 %v237_v13, %v194_v26  ;;  %v1429_v33 = vadd.f32 %v237_v13, %v196_v31  ;;  %v233_v26 = vrot.slane %v219_v56, %v225_v19 }
  0xd4   :  { %v149_v34 = vpop.xlane.xlu0 %148  ;;  %v155_v35 = vpop.xlane.xlu1 %154 }
  0xd5   :  { %v195_v36 = vadd.f32 %v1422_v21, %v149_v34  ;;  %v261_v43 = vsel %vm260_vm0, %v1427_v32, -inf  ;;  %v197_v44 = vadd.f32 %v1422_v21, %v155_v35  ;;  %v267_v45 = vsel %vm260_vm0, %v1429_v33, -inf }
  0xd6   :  { %262 = vmax.xlane.f32.xlu0 %v261_v43  ;;  %v241_v19 = vrot.slane %v233_v26, %v1278_v5 }
  0xd7   :  { %v1437_v46 = vadd.f32 %v237_v13, %v195_v36  ;;  %v1439_v47 = vadd.f32 %v237_v13, %v197_v44 }
  0xd8   :  { %v158_v57 = vpop.xlane.xlu0 %157  ;;  %v161_v58 = vpop.xlane.xlu1 %160 }
  0xd9   :  { %v198_v59 = vadd.f32 %v1422_v21, %v158_v57  ;;  %v264_v62 = vsel %vm260_vm0, %v1437_v46, -inf  ;;  %v199_v63 = vadd.f32 %v1422_v21, %v161_v58  ;;  %v270_v12 = vsel %vm260_vm0, %v1439_v47, -inf }
  0xda   :  { %268 = vmax.xlane.f32.xlu0 %v267_v45  ;;  %265 = vmax.xlane.f32.xlu1 %v264_v62 }
  0xdb   :  { %v1447_v24 = vadd.f32 %v237_v13, %v198_v59  ;;  %v1449_v25 = vadd.f32 %v237_v13, %v199_v63 }
  0xdc   :  { %v164_v20 = vpop.xlane.xlu0 %163  ;;  %v167_v31 = vpop.xlane.xlu1 %166 }
  0xdd   :  { %v200_v34 = vadd.f32 %v1422_v21, %v164_v20  ;;  %v273_v35 = vsel %vm260_vm0, %v1447_v24, -inf  ;;  %v201_v36 = vadd.f32 %v1422_v21, %v167_v31  ;;  %v276_v43 = vsel %vm260_vm0, %v1449_v25, -inf }
  0xde   :  { %271 = vmax.xlane.f32.xlu1 %v270_v12  ;;  %274 = vmax.xlane.f32.xlu0 %v273_v35 }
  0xdf   :  { %v1457_v44 = vadd.f32 %v237_v13, %v200_v34  ;;  %v1459_v45 = vadd.f32 %v237_v13, %v201_v36 }
  0xe0   :  { %v170_v56 = vpop.xlane.xlu0 %169  ;;  %v173_v57 = vpop.xlane.xlu1 %172 }
  0xe1   :  { %v202_v58 = vadd.f32 %v1422_v21, %v170_v56  ;;  %v279_v59 = vsel %vm260_vm0, %v1457_v44, -inf  ;;  %v203_v62 = vadd.f32 %v1422_v21, %v173_v57  ;;  %v282_v63 = vsel %vm260_vm0, %v1459_v45, -inf }
  0xe2   :  { %277 = vmax.xlane.f32.xlu1 %v276_v43  ;;  %280 = vmax.xlane.f32.xlu0 %v279_v59 }
  0xe3   :  { %v1468_v12 = vadd.f32 %v241_v19, %v202_v58  ;;  %v1470_v13 = vadd.f32 %v241_v19, %v203_v62 }
  0xe4   :  { %v176_v20 = vpop.xlane.xlu0 %175  ;;  %v179_v5 = vpop.xlane.xlu1 %178 }
  0xe5   :  { %v204_v26 = vadd.f32 %v1422_v21, %v176_v20  ;;  %v285_v31 = vsel %vm260_vm0, %v1468_v12, -inf  ;;  %v205_v34 = vadd.f32 %v1422_v21, %v179_v5  ;;  %v288_v35 = vsel %vm260_vm0, %v1470_v13, -inf }
  0xe6   :  { %283 = vmax.xlane.f32.xlu1 %v282_v63  ;;  %286 = vmax.xlane.f32.xlu0 %v285_v31 }
  0xe7   :  { %v1478_v36 = vadd.f32 %v241_v19, %v204_v26  ;;  %v1480_v43 = vadd.f32 %v241_v19, %v205_v34 }
  0xe8   :  { %v182_v56 = vpop.xlane.xlu0 %181  ;;  %v185_v57 = vpop.xlane.xlu1 %184 }
  0xe9   :  { %v206_v58 = vadd.f32 %v1422_v21, %v182_v56  ;;  %v291_v59 = vsel %vm260_vm0, %v1478_v36, -inf  ;;  %v207_v62 = vadd.f32 %v1422_v21, %v185_v57  ;;  %v294_v63 = vsel %vm260_vm0, %v1480_v43, -inf }
  0xea   :  { %289 = vmax.xlane.f32.xlu1 %v288_v35  ;;  %292 = vmax.xlane.f32.xlu0 %v291_v59 }
  0xeb   :  { %v1488_v20 = vadd.f32 %v241_v19, %v206_v58  ;;  %v1490_v5 = vadd.f32 %v241_v19, %v207_v62 }
  0xec   :  { %v188_v26 = vpop.xlane.xlu0 %187  ;;  %v191_v31 = vpop.xlane.xlu1 %190 }
  0xed   :  { %v208_v34 = vadd.f32 %v1422_v21, %v188_v26  ;;  %v297_v56 = vsel %vm260_vm0, %v1488_v20, -inf  ;;  %v209_v6 = vadd.f32 %v1422_v21, %v191_v31  ;;  %v300_v35 = vsel %vm260_vm0, %v1490_v5, -inf }
  0xee   :  { %295 = vmax.xlane.f32.xlu1 %v294_v63  ;;  %298 = vmax.xlane.f32.xlu0 %v297_v56 }
  0xef   :  { %v1498_v57 = vadd.f32 %v241_v19, %v208_v34  ;;  %v1500_v58 = vadd.f32 %v241_v19, %v209_v6 }
  0xf1   :  { %v303_v59 = vsel %vm260_vm0, %v1498_v57, -inf  ;;  %v306_v62 = vsel %vm260_vm0, %v1500_v58, -inf }
  0xf2   :  { %301 = vmax.xlane.f32.xlu1 %v300_v35  ;;  %304 = vmax.xlane.f32.xlu0 %v303_v59 }
  0xf6   :  { %307 = vmax.xlane.f32.xlu1 %v306_v62 }
 0x163   :  { %v263_v26 = vpop.xlane.xlu0 %262 }
 0x164   :  { %v309_v21 = vsub.f32 %v1427_v32, %v263_v26 }
 0x166   :  { %v325_v63 = vmul.f32 1.442695, %v309_v21 }
 0x167   :  { %v266_v31 = vpop.xlane.xlu1 %265  ;;  %v269_v56 = vpop.xlane.xlu0 %268 }
 0x168   :  { %1040 = vpow2.f32 %v325_v63  ;;  %v310_v34 = vsub.f32 %v1437_v46, %v266_v31  ;;  %v311_v6 = vsub.f32 %v1429_v33, %v269_v56 }
 0x16a   :  { %v327_v19 = vmul.f32 1.442695, %v310_v34  ;;  %v329_v55 = vmul.f32 1.442695, %v311_v6 }
 0x16b   :  { %v272_v52 = vpop.xlane.xlu1 %271  ;;  %v275_v35 = vpop.xlane.xlu0 %274 }
 0x16c   :  { %1042 = vpow2.f32 %v327_v19  ;;  %v312_v59 = vsub.f32 %v1439_v47, %v272_v52  ;;  %v313_v62 = vsub.f32 %v1447_v24, %v275_v35 }
 0x16d   :  { %1044 = vpow2.f32 %v329_v55 }
 0x16e   :  { %v331_v17 = vmul.f32 1.442695, %v312_v59  ;;  %v333_v32 = vmul.f32 1.442695, %v313_v62 }
 0x16f   :  { %v278_v26 = vpop.xlane.xlu1 %277  ;;  %v281_v21 = vpop.xlane.xlu0 %280 }
 0x170   :  { %1046 = vpow2.f32 %v331_v17  ;;  %v314_v63 = vsub.f32 %v1449_v25, %v278_v26  ;;  %v315_v46 = vsub.f32 %v1457_v44, %v281_v21 }
 0x171   :  { %1048 = vpow2.f32 %v333_v32 }
 0x172   :  { %v1513_v33 = vpop.eup %1040  ;;  %v335_v31 = vmul.f32 1.442695, %v314_v63  ;;  %v337_v56 = vmul.f32 1.442695, %v315_v46 }
 0x173   :  { %v284_v34 = vpop.xlane.xlu1 %283  ;;  %v287_v6 = vpop.xlane.xlu0 %286  ;;  %v357_v52 = vsel %vm260_vm0, %v1513_v33, 0.0 }
 0x174   :  { %1050 = vpow2.f32 %v335_v31  ;;  %v316_v55 = vsub.f32 %v1459_v45, %v284_v34  ;;  %v317_v47 = vsub.f32 %v1468_v12, %v287_v6  ;;  %358 = vadd.xlane.f32.xlu0 %v357_v52 }
 0x175   :  { %1052 = vpow2.f32 %v337_v56 }
 0x176   :  { %v1519_v17 = vpop.eup %1042  ;;  %v339_v24 = vmul.f32 1.442695, %v316_v55  ;;  %v341_v25 = vmul.f32 1.442695, %v317_v47 }
 0x177   :  { %v1521_v44 = vpop.eup %1044  ;;  %v290_v19 = vpop.xlane.xlu1 %289  ;;  %v360_v59 = vsel %vm260_vm0, %v1519_v17, 0.0 }
 0x178   :  { %v293_v35 = vpop.xlane.xlu0 %292  ;;  %1054 = vpow2.f32 %v339_v24  ;;  %v318_v62 = vsub.f32 %v1470_v13, %v290_v19  ;;  %361 = vadd.xlane.f32.xlu1 %v360_v59  ;;  %v363_v12 = vsel %vm260_vm0, %v1521_v44, 0.0 }
 0x179   :  { %v319_v45 = vsub.f32 %v1478_v36, %v293_v35  ;;  %1056 = vpow2.f32 %v341_v25  ;;  %364 = vadd.xlane.f32.xlu0 %v363_v12 }
 0x17a   :  { %v1529_v32 = vpop.eup %1046  ;;  %v343_v26 = vmul.f32 1.442695, %v318_v62 }
 0x17b   :  { %v345_v21 = vmul.f32 1.442695, %v319_v45  ;;  %v1531_v63 = vpop.eup %1048  ;;  %v296_v46 = vpop.xlane.xlu1 %295  ;;  %v366_v56 = vsel %vm260_vm0, %v1529_v32, 0.0 }
 0x17c   :  { %v299_v31 = vpop.xlane.xlu0 %298  ;;  %1058 = vpow2.f32 %v343_v26  ;;  %v320_v13 = vsub.f32 %v1480_v43, %v296_v46  ;;  %367 = vadd.xlane.f32.xlu1 %v366_v56  ;;  %v369_v34 = vsel %vm260_vm0, %v1531_v63, 0.0 }
 0x17d   :  { %v321_v36 = vsub.f32 %v1488_v20, %v299_v31  ;;  %1060 = vpow2.f32 %v345_v21  ;;  %370 = vadd.xlane.f32.xlu0 %v369_v34 }
 0x17e   :  { %v1539_v6 = vpop.eup %1050  ;;  %v347_v52 = vmul.f32 1.442695, %v320_v13 }
 0x17f   :  { %v349_v55 = vmul.f32 1.442695, %v321_v36  ;;  %v1541_v47 = vpop.eup %1052  ;;  %v302_v24 = vpop.xlane.xlu1 %301  ;;  %v372_v19 = vsel %vm260_vm0, %v1539_v6, 0.0 }
 0x180   :  { %v305_v25 = vpop.xlane.xlu0 %304  ;;  %1062 = vpow2.f32 %v347_v52  ;;  %v322_v43 = vsub.f32 %v1490_v5, %v302_v24  ;;  %373 = vadd.xlane.f32.xlu1 %v372_v19  ;;  %v375_v35 = vsel %vm260_vm0, %v1541_v47, 0.0 }
 0x181   :  { %v323_v20 = vsub.f32 %v1498_v57, %v305_v25  ;;  %1064 = vpow2.f32 %v349_v55  ;;  %376 = vadd.xlane.f32.xlu0 %v375_v35 }
 0x182   :  { %v1549_v59 = vpop.eup %1054  ;;  %v351_v62 = vmul.f32 1.442695, %v322_v43 }
 0x183   :  { %v353_v45 = vmul.f32 1.442695, %v323_v20  ;;  %v1551_v12 = vpop.eup %1056  ;;  %v308_v26 = vpop.xlane.xlu1 %307  ;;  %v378_v21 = vsel %vm260_vm0, %v1549_v59, 0.0 }
 0x184   :  { %1066 = vpow2.f32 %v351_v62  ;;  %v324_v5 = vsub.f32 %v1500_v58, %v308_v26  ;;  %379 = vadd.xlane.f32.xlu1 %v378_v21  ;;  %v381_v57 = vsel %vm260_vm0, %v1551_v12, 0.0 }
 0x185   :  { %1068 = vpow2.f32 %v353_v45  ;;  %382 = vadd.xlane.f32.xlu0 %v381_v57 }
 0x186   :  { %v1558_v46 = vpop.eup %1058  ;;  %v355_v31 = vmul.f32 1.442695, %v324_v5 }
 0x187   :  { %v1560_v56 = vpop.eup %1060  ;;  %v384_v13 = vsel %vm260_vm0, %v1558_v46, 0.0 }
 0x188   :  { %1070 = vpow2.f32 %v355_v31  ;;  %385 = vadd.xlane.f32.xlu1 %v384_v13  ;;  %v387_v36 = vsel %vm260_vm0, %v1560_v56, 0.0  ;;  %v1589_v31 = vld [vmem:[%s1766_s3] ss:$0 sm:$0xff]  ;;  %s927_s3 = sld [smem:[#allocation8 + $0x1]] }
 0x189   :  { %388 = vadd.xlane.f32.xlu0 %v387_v36 }
 0x18a   :  { %v1566_v58 = vpop.eup %1062 }
 0x18b   :  { %v1568_v34 = vpop.eup %1064  ;;  %v390_v52 = vsel %vm260_vm0, %v1566_v58, 0.0 }
 0x18c   :  { %391 = vadd.xlane.f32.xlu1 %v390_v52  ;;  %v393_v55 = vsel %vm260_vm0, %v1568_v34, 0.0 }
 0x18d   :  { %394 = vadd.xlane.f32.xlu0 %v393_v55 }
 0x18e   :  { %v1574_v24 = vpop.eup %1066 }
 0x18f   :  { %v1576_v25 = vpop.eup %1068  ;;  %v396_v19 = vsel %vm260_vm0, %v1574_v24, 0.0 }
 0x190   :  { %397 = vadd.xlane.f32.xlu1 %v396_v19  ;;  %v399_v43 = vsel %vm260_vm0, %v1576_v25, 0.0 }
 0x191   :  { %400 = vadd.xlane.f32.xlu0 %v399_v43 }
 0x192   :  { %v1582_v20 = vpop.eup %1070 }
 0x193   :  { %v402_v35 = vsel %vm260_vm0, %v1582_v20, 0.0 }
 0x194   :  { %403 = vadd.xlane.f32.xlu1 %v402_v35 }
 0x201   :  { %v359_v62 = vpop.xlane.xlu0 %358 }
 0x202   :  { %1072 = vrcp.f32 %v359_v62 }
 0x205   :  { %v362_v45 = vpop.xlane.xlu1 %361 }
 0x206   :  { %1074 = vrcp.f32 %v362_v45  ;;  %v365_v26 = vpop.xlane.xlu0 %364 }
 0x207   :  { %1076 = vrcp.f32 %v365_v26 }
 0x209   :  { %v368_v21 = vpop.xlane.xlu1 %367 }
 0x20a   :  { %1078 = vrcp.f32 %v368_v21  ;;  %v371_v5 = vpop.xlane.xlu0 %370 }
 0x20b   :  { %1080 = vrcp.f32 %v371_v5 }
 0x20c   :  { %v1073_v57 = vpop.eup %1072 }
 0x20d   :  { %v374_v13 = vpop.xlane.xlu1 %373  ;;  %v406_v36 = vmul.f32 %v1073_v57, %v1513_v33 }
 0x20e   :  { %1082 = vrcp.f32 %v374_v13  ;;  %v377_v52 = vpop.xlane.xlu0 %376 }
 0x20f   :  { %1084 = vrcp.f32 %v377_v52  ;;  %v444_v55 = vmul.f32 %v1589_v31, %v406_v36 }
 0x210   :  { %v1075_v19 = vpop.eup %1074 }
 0x211   :  { %v1077_v43 = vpop.eup %1076  ;;  %v380_v35 = vpop.xlane.xlu1 %379  ;;  %v460_v62 = vsel %vm260_vm0, %v444_v55, 0.0  ;;  %v408_v45 = vmul.f32 %v1075_v19, %v1519_v17 }
 0x212   :  { %1086 = vrcp.f32 %v380_v35  ;;  %v383_v26 = vpop.xlane.xlu0 %382  ;;  %461 = vadd.xlane.f32.xlu0 %v460_v62  ;;  %v410_v21 = vmul.f32 %v1077_v43, %v1521_v44 }
 0x213   :  { %1088 = vrcp.f32 %v383_v26  ;;  %v445_v33 = vmul.f32 %v1589_v31, %v408_v45 }
 0x214   :  { %v1079_v5 = vpop.eup %1078  ;;  %v446_v57 = vmul.f32 %v1589_v31, %v410_v21 }
 0x215   :  { %v1081_v13 = vpop.eup %1080  ;;  %v386_v36 = vpop.xlane.xlu1 %385  ;;  %v463_v52 = vsel %vm260_vm0, %v445_v33, 0.0  ;;  %v412_v0 = vmul.f32 %v1079_v5, %v1529_v32 }
 0x216   :  { %1090 = vrcp.f32 %v386_v36  ;;  %v389_v55 = vpop.xlane.xlu0 %388  ;;  %464 = vadd.xlane.f32.xlu1 %v463_v52  ;;  %v466_v17 = vsel %vm260_vm0, %v446_v57, 0.0  ;;  %v414_v19 = vmul.f32 %v1081_v13, %v1531_v63 }
 0x217   :  { %1092 = vrcp.f32 %v389_v55  ;;  %467 = vadd.xlane.f32.xlu0 %v466_v17  ;;  %v447_v44 = vmul.f32 %v1589_v31, %v412_v0 }
 0x218   :  { %v1083_v43 = vpop.eup %1082  ;;  %v448_v35 = vmul.f32 %v1589_v31, %v414_v19 }
 0x219   :  { %v1085_v62 = vpop.eup %1084  ;;  %v392_v45 = vpop.xlane.xlu1 %391  ;;  %v469_v26 = vsel %vm260_vm0, %v447_v44, 0.0  ;;  %v416_v32 = vmul.f32 %v1083_v43, %v1539_v6 }
 0x21a   :  { %1094 = vrcp.f32 %v392_v45  ;;  %v395_v21 = vpop.xlane.xlu0 %394  ;;  %470 = vadd.xlane.f32.xlu1 %v469_v26  ;;  %v472_v33 = vsel %vm260_vm0, %v448_v35, 0.0  ;;  %v418_v63 = vmul.f32 %v1085_v62, %v1541_v47 }
 0x21b   :  { %1096 = vrcp.f32 %v395_v21  ;;  %473 = vadd.xlane.f32.xlu0 %v472_v33  ;;  %v449_v0 = vmul.f32 %v1589_v31, %v416_v32 }
 0x21c   :  { %v1087_v5 = vpop.eup %1086  ;;  %v450_v57 = vmul.f32 %v1589_v31, %v418_v63  ;;  %v966_v63 = vpack.c.bf16 %v1287_v10, %v1275_v4  ;;  %v970_v10 = vpack.c.bf16 %v1296_v14, %v1283_v8  ;;  %v974_v14 = vpack.c.bf16 %v1326_v29, %v1314_v23 }
 0x21d   :  { %v1089_v13 = vpop.eup %1088  ;;  %v398_v36 = vpop.xlane.xlu1 %397  ;;  %v475_v52 = vsel %vm260_vm0, %v449_v0, 0.0  ;;  %v420_v6 = vmul.f32 %v1087_v5, %v1549_v59  ;;  %v980_v29 = vpack.c.bf16 %v1340_v40, %v1336_v38  ;;  %v789_v38 = vld [vmem:[#allocation6 + $0x10] sm:$0xff]  ;;  %v790_v40 = vld [vmem:[#allocation6 + $0x18] sm:$0xff] }
 0x21e   :  { %1098 = vrcp.f32 %v398_v36  ;;  %v401_v55 = vpop.xlane.xlu0 %400  ;;  %476 = vadd.xlane.f32.xlu1 %v475_v52  ;;  %v478_v17 = vsel %vm260_vm0, %v450_v57, 0.0  ;;  %v422_v47 = vmul.f32 %v1089_v13, %v1551_v12  ;;  %v968_v57 = vpack.c.bf16 %v1285_v9, %v1270_v2  ;;  %967 = vmatprep.subr.bf16.mxu1 %v966_v63 }
 0x21f   :  { %1100 = vrcp.f32 %v401_v55  ;;  %479 = vadd.xlane.f32.xlu0 %v478_v17  ;;  %v451_v19 = vmul.f32 %v1589_v31, %v420_v6  ;;  %v972_v55 = vpack.c.bf16 %v1289_v11, %v1281_v7  ;;  %v976_v7 = vpack.c.bf16 %v1324_v28, %v1312_v22  ;;  %v803_v22 = vld [vmem:[#allocation6 + $0x80] sm:$0xff]  ;;  %v804_v28 = vld [vmem:[#allocation6 + $0x88] sm:$0xff] }
 0x220   :  { %v1091_v44 = vpop.eup %1090  ;;  %v452_v43 = vmul.f32 %v1589_v31, %v422_v47  ;;  %969 = vmatpush1.bf16.msra.mxu1 %v968_v57 }
 0x221   :  { %v1093_v35 = vpop.eup %1092  ;;  %v404_v62 = vpop.xlane.xlu1 %403  ;;  %v481_v45 = vsel %vm260_vm0, %v451_v19, 0.0  ;;  %v424_v59 = vmul.f32 %v1091_v44, %v1558_v46  ;;  %971 = vmatprep.subr.bf16.mxu1 %v970_v10  ;;  %v978_v44 = vpack.c.bf16 %v1342_v41, %v1338_v39  ;;  %v788_v39 = vld [vmem:[#allocation6 + $0x8] sm:$0xff]  ;;  %v805_v41 = vld [vmem:[#allocation6 + $0x90] sm:$0xff] }
 0x222   :  { %1102 = vrcp.f32 %v404_v62  ;;  %482 = vadd.xlane.f32.xlu1 %v481_v45  ;;  %v484_v26 = vsel %vm260_vm0, %v452_v43, 0.0  ;;  %v426_v32 = vmul.f32 %v1093_v35, %v1560_v56  ;;  %v1198_v43 = vmov 0.0   ;;  %v806_v62 = vld [vmem:[#allocation6 + $0x98] sm:$0xff] }
 0x223   :  { %485 = vadd.xlane.f32.xlu0 %v484_v26  ;;  %v453_v12 = vmul.f32 %v1589_v31, %v424_v59  ;;  %656 = vmatprep.mubr.f32.mxu1 %v1198_v43  ;;  %v998_v35 = vpack.c.bf16 %v804_v28, %v803_v22  ;;  %v1002_v59 = vpack.c.bf16 %v806_v62, %v805_v41 }
 0x224   :  { %v1095_v21 = vpop.eup %1094  ;;  %v454_v33 = vmul.f32 %v1589_v31, %v426_v32  ;;  %973 = vmatpush1.bf16.msra.mxu1 %v972_v55  ;;  %v1004_v26 = vpack.c.bf16 %v790_v40, %v789_v38 }
 0x225   :  { %v1097_v0 = vpop.eup %1096  ;;  %v487_v5 = vsel %vm260_vm0, %v453_v12, 0.0  ;;  %v428_v46 = vmul.f32 %v1095_v21, %v1566_v58  ;;  %975 = vmatprep.subr.bf16.mxu1 %v974_v14  ;;  %999 = vmatprep.subr.bf16.mxu0 %v998_v35  ;;  %v1659_v12 = vstv %s927_s3 }
 0x226   :  { %488 = vadd.xlane.f32.xlu1 %v487_v5  ;;  %v490_v56 = vsel %vm260_vm0, %v454_v33, 0.0  ;;  %v430_v13 = vmul.f32 %v1097_v0, %v1568_v34 }
 0x227   :  { %491 = vadd.xlane.f32.xlu0 %v490_v56  ;;  %v455_v36 = vmul.f32 %v1589_v31, %v428_v46 }
 0x228   :  { %v1099_v52 = vpop.eup %1098  ;;  %v456_v4 = vmul.f32 %v1589_v31, %v430_v13  ;;  %977 = vmatpush1.bf16.msra.mxu1 %v976_v7 }
 0x229   :  { %v1101_v58 = vpop.eup %1100  ;;  %v493_v6 = vsel %vm260_vm0, %v455_v36, 0.0  ;;  %v432_v2 = vmul.f32 %v1099_v52, %v1574_v24  ;;  %979 = vmatprep.subr.bf16.mxu1 %v978_v44 }
 0x22a   :  { %494 = vadd.xlane.f32.xlu1 %v493_v6  ;;  %v496_v9 = vsel %vm260_vm0, %v456_v4, 0.0  ;;  %v434_v34 = vmul.f32 %v1101_v58, %v1576_v25 }
 0x22b   :  { %497 = vadd.xlane.f32.xlu0 %v496_v9  ;;  %v457_v17 = vmul.f32 %v1589_v31, %v432_v2 }
 0x22c   :  { %v1103_v47 = vpop.eup %1102  ;;  %v458_v8 = vmul.f32 %v1589_v31, %v434_v34  ;;  %981 = vmatpush1.bf16.msra.mxu1 %v980_v29 }
 0x22d   :  { %v499_v24 = vsel %vm260_vm0, %v457_v17, 0.0  ;;  %v436_v19 = vmul.f32 %v1103_v47, %v1582_v20  ;;  %v982_v20 = vpack.c.bf16 %v1358_v51, %v1352_v48  ;;  %v1772_v48 = vlaneseq }
 0x22e   :  { %500 = vadd.xlane.f32.xlu1 %v499_v24  ;;  %v502_v25 = vsel %vm260_vm0, %v458_v8, 0.0 }
 0x22f   :  { %503 = vadd.xlane.f32.xlu0 %v502_v25  ;;  %v459_v11 = vmul.f32 %v1589_v31, %v436_v19  ;;  %983 = vmatprep.subr.bf16.mxu1 %v982_v20  ;;  %v787_v31 = vld [vmem:[#allocation6] sm:$0xff]  ;;  %v535_v51 = vand.u32 127, %v1772_v48 }
 0x230   :  { %v1000_v45 = vpack.c.bf16 %v788_v39, %v787_v31 }
 0x231   :  { %v505_v23 = vsel %vm260_vm0, %v459_v11, 0.0  ;;  %v540_v32 = vadd.s32 4294967288, %v535_v51  ;;  %v547_v33 = vadd.s32 4294967280, %v535_v51  ;;  %v1662_v63 = vsub.s32 %v535_v51, %v1268_v1 }
 0x232   :  { %506 = vadd.xlane.f32.xlu1 %v505_v23  ;;  %1001 = vmatpush3.bf16.msra.mxu0 %v1000_v45  ;;  %v554_v46 = vadd.s32 4294967272, %v535_v51  ;;  %v561_v13 = vadd.s32 4294967264, %v535_v51  ;;  %v568_v2 = vadd.s32 4294967256, %v535_v51  ;;  %v575_v17 = vadd.s32 4294967248, %v535_v51 }
 0x233   :  { %1003 = vmatprep.subr.bf16.mxu0 %v1002_v59  ;;  %v1666_v5 = vsub.s32 %v540_v32, %v1268_v1  ;;  %v1669_v56 = vsub.s32 %v547_v33, %v1268_v1  ;;  %v582_v7 = vadd.s32 4294967240, %v535_v51 }
 0x234   :  { %v1676_v6 = vsub.s32 %v554_v46, %v1268_v1  ;;  %v1680_v55 = vsub.s32 %v561_v13, %v1268_v1  ;;  %v1687_v25 = vsub.s32 %v568_v2, %v1268_v1  ;;  %v1692_v29 = vsub.s32 %v575_v17, %v1268_v1 }
 0x235   :  { %v585_v39 = vsub.s32 %v582_v7, %v1268_v1  ;;  %v986_v1 = vpack.c.bf16 %v1384_v18, %v1380_v3  ;;  %v792_v7 = vld [vmem:[#allocation6 + $0x28] sm:$0xff] }
 0x236   :  { %1005 = vmatpush3.bf16.msra.mxu0 %v1004_v26 }
 0x29f   :  { %v462_v21 = vpop.xlane.xlu0 %461 }
 0x2a0   :  { %v510_v0 = vadd.f32 %v1659_v12, %v462_v21 }
 0x2a2   :  { %v539_v10 = vrot.slane %v510_v0, %v1662_v63 }
 0x2a3   :  { %v465_v57 = vpop.xlane.xlu1 %464 }
 0x2a4   :  { %v511_v36 = vadd.f32 %v1659_v12, %v465_v57  ;;  %v468_v52 = vpop.xlane.xlu0 %467 }
 0x2a5   :  { %v512_v4 = vadd.f32 %v1659_v12, %v468_v52  ;;  %v990_v52 = vpack.c.bf16 %v1396_v30, %v1394_v27  ;;  %v994_v27 = vpack.c.bf16 %v1408_v42, %v1406_v37 }
 0x2a6   :  { %v544_v58 = vrot.slane %v511_v36, %v1666_v5  ;;  %v1773_v36 = vpack.c.bf16 %v1300_v16, %v1298_v15  ;;  %v1774_v15 = vpack.c.bf16 %v1356_v50, %v1354_v49  ;;  %v1775_v49 = vpack.c.bf16 %v1364_v54, %v1362_v53  ;;  %v807_v54 = vld [vmem:[#allocation6 + $0xa0] sm:$0xff] }
 0x2a7   :  { %v551_v9 = vrot.slane %v512_v4, %v1669_v56  ;;  %v471_v34 = vpop.xlane.xlu1 %470 }
 0x2a8   :  { %v546_v47 = vsel %vm545_vm1, %v544_v58, %v539_v10  ;;  %v513_v8 = vadd.f32 %v1659_v12, %v471_v34  ;;  %v474_v14 = vpop.xlane.xlu0 %473 }
 0x2a9   :  { %v514_v24 = vadd.f32 %v1659_v12, %v474_v14  ;;  %v553_v11 = vsel %vm552_vm2, %v551_v9, %v546_v47 }
 0x2aa   :  { %v558_v19 = vrot.slane %v513_v8, %v1676_v6  ;;  %v1776_v8 = vpack.c.bf16 %v1376_v61, %v1374_v60  ;;  %v794_v60 = vld [vmem:[#allocation6 + $0x38] sm:$0xff]  ;;  %v811_v61 = vld [vmem:[#allocation6 + $0xc0] sm:$0xff] }
 0x2ab   :  { %v565_v44 = vrot.slane %v514_v24, %v1680_v55  ;;  %v477_v23 = vpop.xlane.xlu1 %476  ;;  %v808_v24 = vld [vmem:[#allocation6 + $0xa8] sm:$0xff] }
 0x2ac   :  { %v560_v20 = vsel %vm559_vm3, %v558_v19, %v553_v11  ;;  %v515_v22 = vadd.f32 %v1659_v12, %v477_v23  ;;  %v480_v28 = vpop.xlane.xlu0 %479  ;;  %v1006_v19 = vpack.c.bf16 %v808_v24, %v807_v54  ;;  %v793_v23 = vld [vmem:[#allocation6 + $0x30] sm:$0xff] }
 0x2ad   :  { %v516_v31 = vadd.f32 %v1659_v12, %v480_v28  ;;  %v567_v41 = vsel %vm566_vm4, %v565_v44, %v560_v20  ;;  %v810_v44 = vld [vmem:[#allocation6 + $0xb8] sm:$0xff]  ;;  %v812_v20 = vld [vmem:[#allocation6 + $0xc8] sm:$0xff] }
 0x2ae   :  { %v572_v35 = vrot.slane %v515_v22, %v1687_v25  ;;  %1007 = vmatprep.subr.bf16.mxu0 %v1006_v19  ;;  %v1012_v22 = vpack.c.bf16 %v794_v60, %v793_v23  ;;  %v1014_v28 = vpack.c.bf16 %v812_v20, %v811_v61 }
 0x2af   :  { %v579_v62 = vrot.slane %v516_v31, %v1692_v29  ;;  %v483_v45 = vpop.xlane.xlu1 %482  ;;  %v795_v31 = vld [vmem:[#allocation6 + $0x40] sm:$0xff] }
 0x2b0   :  { %v574_v59 = vsel %vm573_vm5, %v572_v35, %v567_v41  ;;  %v517_v38 = vadd.f32 %v1659_v12, %v483_v45  ;;  %v486_v40 = vpop.xlane.xlu0 %485  ;;  %v796_v35 = vld [vmem:[#allocation6 + $0x48] sm:$0xff]  ;;  %v814_v41 = vld [vmem:[#allocation6 + $0xd8] sm:$0xff] }
 0x2b1   :  { %v518_v48 = vadd.f32 %v1659_v12, %v486_v40  ;;  %v581_v32 = vsel %vm580_vm6, %v579_v62, %v574_v59  ;;  %v1016_v62 = vpack.c.bf16 %v796_v35, %v795_v31  ;;  %v797_v59 = vld [vmem:[#allocation6 + $0x50] sm:$0xff] }
 0x2b2   :  { %v586_v26 = vrot.slane %v517_v38, %v585_v39  ;;  %v798_v38 = vld [vmem:[#allocation6 + $0x58] sm:$0xff] }
 0x2b3   :  { %v489_v51 = vpop.xlane.xlu1 %488  ;;  %v674_v57 = vrot.slane %v518_v48, %v1662_v63  ;;  %v1020_v40 = vpack.c.bf16 %v798_v38, %v797_v59  ;;  %v816_v48 = vld [vmem:[#allocation6 + $0xe8] sm:$0xff] }
 0x2b4   :  { %v519_v21 = vadd.f32 %v1659_v12, %v489_v51  ;;  %v492_v33 = vpop.xlane.xlu0 %491  ;;  %v588_v0 = vsel %vm587_vm7, %v586_v26, %v581_v32  ;;  %v815_v26 = vld [vmem:[#allocation6 + $0xe0] sm:$0xff] }
 0x2b5   :  { %v520_v46 = vadd.f32 %v1659_v12, %v492_v33  ;;  %928 = vmatmul.mubr.msk.f32.vlgmr.msra.gmra.mrb[0].mxu1 %vm589_vm8, %v588_v0  ;;  %v1022_v51 = vpack.c.bf16 %v816_v48, %v815_v26  ;;  %v799_v32 = vld [vmem:[#allocation6 + $0x60] sm:$0xff]  ;;  %v817_v33 = vld [vmem:[#allocation6 + $0xf0] sm:$0xff]  ;;  %v818_v0 = vld [vmem:[#allocation6 + $0xf8] sm:$0xff] }
 0x2b6   :  { %v678_v13 = vrot.slane %v519_v21, %v1666_v5  ;;  %985 = vmatpush1.bf16.msra.mxu1 %v1773_v36  ;;  %776 = vmatprep.mubr.f32.mxu1 %v1198_v43 }
 0x2b7   :  { %v683_v3 = vrot.slane %v520_v46, %v1669_v56  ;;  %v495_v18 = vpop.xlane.xlu1 %494  ;;  %987 = vmatprep.subr.bf16.mxu1 %v986_v1  ;;  %v800_v1 = vld [vmem:[#allocation6 + $0x68] sm:$0xff]  ;;  %v1026_v46 = vpack.c.bf16 %v818_v0, %v817_v33 }
 0x2b8   :  { %v679_v4 = vsel %vm545_vm1, %v678_v13, %v674_v57  ;;  %v521_v10 = vadd.f32 %v1659_v12, %v495_v18  ;;  %v498_v63 = vpop.xlane.xlu0 %497  ;;  %v1024_v21 = vpack.c.bf16 %v800_v1, %v799_v32  ;;  %v801_v57 = vld [vmem:[#allocation6 + $0x70] sm:$0xff]  ;;  %v802_v13 = vld [vmem:[#allocation6 + $0x78] sm:$0xff] }
 0x2b9   :  { %v522_v5 = vadd.f32 %v1659_v12, %v498_v63  ;;  %v684_v16 = vsel %vm552_vm2, %v683_v3, %v679_v4  ;;  %v1028_v36 = vpack.c.bf16 %v802_v13, %v801_v57 }
 0x2ba   :  { %v688_v58 = vrot.slane %v521_v10, %v1676_v6  ;;  %989 = vmatpush1.bf16.msra.mxu1 %v1774_v15 }
 0x2bb   :  { %v693_v43 = vrot.slane %v522_v5, %v1680_v55  ;;  %v501_v56 = vpop.xlane.xlu1 %500  ;;  %991 = vmatprep.subr.bf16.mxu1 %v990_v52 }
 0x2bc   :  { %v689_v30 = vsel %vm559_vm3, %v688_v58, %v684_v16  ;;  %v523_v2 = vadd.f32 %v1659_v12, %v501_v56  ;;  %v504_v9 = vpop.xlane.xlu0 %503 }
 0x2bd   :  { %v524_v6 = vadd.f32 %v1659_v12, %v504_v9  ;;  %v694_v50 = vsel %vm566_vm4, %v693_v43, %v689_v30 }
 0x2be   :  { %v698_v34 = vrot.slane %v523_v2, %v1687_v25  ;;  %993 = vmatpush1.bf16.msra.mxu1 %v1775_v49  ;;  %v791_v25 = vld [vmem:[#allocation6 + $0x20] sm:$0xff] }
 0x2bf   :  { %v703_v55 = vrot.slane %v524_v6, %v1692_v29  ;;  %v507_v17 = vpop.xlane.xlu1 %506  ;;  %995 = vmatprep.subr.bf16.mxu1 %v994_v27  ;;  %v1008_v11 = vpack.c.bf16 %v792_v7, %v791_v25  ;;  %v930_v2 = vld [vmem:[%s1768_s5] ss:$0 sm:$0xff] }
 0x2c0   :  { %v699_v37 = vsel %vm573_vm5, %v698_v34, %v694_v50  ;;  %v525_v42 = vadd.f32 %v1659_v12, %v507_v17  ;;  %v809_v12 = vld [vmem:[#allocation6 + $0xb0] sm:$0xff] }
 0x2c1   :  { %v704_v14 = vsel %vm580_vm6, %v703_v55, %v699_v37  ;;  %1009 = vmatpush3.bf16.msra.mxu0 %v1008_v11  ;;  %v1010_v29 = vpack.c.bf16 %v810_v44, %v809_v12 }
 0x2c2   :  { %v708_v47 = vrot.slane %v525_v42, %v585_v39  ;;  %997 = vmatpush1.bf16.msra.mxu1 %v1776_v8  ;;  %v813_v39 = vld [vmem:[#allocation6 + $0xd0] sm:$0xff] }
 0x2c3   :  { %1011 = vmatprep.subr.bf16.mxu0 %v1010_v29  ;;  %v1018_v45 = vpack.c.bf16 %v814_v41, %v813_v39 }
 0x2c4   :  { %v709_v53 = vsel %vm587_vm7, %v708_v47, %v704_v14 }
 0x2c5   :  { %929 = vmatmul.mubr.msk.f32.vlgmr.msra.gmra.mrb[2].mxu1 %vm589_vm8, %v709_v53  ;;  %1013 = vmatpush3.bf16.msra.mxu0 %v1012_v22 }
 0x2c6   :  { %1015 = vmatprep.subr.bf16.mxu0 %v1014_v28 }
 0x2c9   :  { %1017 = vmatpush3.bf16.msra.mxu0 %v1016_v62 }
 0x2ca   :  { %1019 = vmatprep.subr.bf16.mxu0 %v1018_v45 }
 0x2cd   :  { %1021 = vmatpush3.bf16.msra.mxu0 %v1020_v40 }
 0x2ce   :  { %1023 = vmatprep.subr.bf16.mxu0 %v1022_v51 }
 0x2d1   :  { %1025 = vmatpush3.bf16.msra.mxu0 %v1024_v21 }
 0x2d2   :  { %1027 = vmatprep.subr.bf16.mxu0 %v1026_v46 }
 0x2d5   :  { %1029 = vmatpush3.bf16.msra.mxu0 %v1028_v36 }
 0x388   :  { %v658_v3 = vpop.f32.mrb[0].mxu1 }
 0x389   :  { %v660_v18 = vpop.f32.mrb[1].mxu1  ;;  %v783_v5 = vmul.f32 0.015625, %v658_v3 }
 0x38a   :  { %v784_v15 = vmul.f32 0.015625, %v660_v18 }
 0x398   :  { %v778_v52 = vpop.f32.mrb[2].mxu1 }
 0x399   :  { %v785_v4 = vmul.f32 0.015625, %v778_v52  ;;  %v780_v10 = vpop.f32.mrb[3].mxu1 }
 0x39a   :  { %v786_v63 = vmul.f32 0.015625, %v780_v10 }
 0x39b   :  { %v830_v58 = vrot.slane %v785_v4, 7 }
 0x39c   :  { %v833_v16 = vrot.slane %v786_v63, 7 }
 0x39d   :  { %v832_v43 = vsel %vm831_vm9, %v830_v58, %v783_v5 }
 0x39e   :  { %v834_v56 = vsel %vm831_vm9, %v833_v16, %v784_v15 }
 0x39f   :  { %901 = vmatprep.mubr.f32.mxu0 %v834_v56 }
 0x3a0   :  { %902 = vmatmul.mubr.f32.vlgmr.msra.gmra.mrb[0].mxu0 %v832_v43 }
 0x473   :  { %v963_v27 = vpop.f32.mrb[0].mxu0 }
 0x474   :  { %v964_v30 = vpop.f32.mrb[1].mxu0 }
 0x475   :  { %v965_v9 = vadd.f32 %v964_v30, %v963_v27 }
 0x477   :  { %v904_v6 = vadd.f32 %v965_v9, %v930_v2 }
 0x479   :  { %907 = vst [vmem:[#allocation9] sm:$0x3] %v904_v6 }
 0x47a   :  { %1171 = shalt.err (!%p1168_p11)
}
 0x47b   :  { %s1172_s20 = scalar_lea.hbm %s1770_s7, 32 }
 0x47c   :  { %p1173_p12 = scmp.ne.s32.totalorder %s1770_s7, %s1172_s20  ;;  %p1176_p13 = scmp.lt.u32.totalorder %s1172_s20, %s1770_s7 }
 0x47e   :  { %p1178_p0 = pnand %p1176_p13, %p1173_p12 }
 0x480   :  { %1181 = shalt.err (!%p1178_p0)
}
 0x481   :  { %917 = dma.vmem_to_hbm [thread:$0]  %s915_s16, 32, %s1770_s7, [#allocation4]  }
 0x482   :  { %1188 = dma.done.wait [#allocation4], 32  }
 0x483   :  { %1189 = vsyncadd [#allocation4], 4294967264 }
 0x484   :  { %921 = vsyncpa [#allocation3], 1 }
 0x485   :  { %922 = vsyncpa [#allocation7], 1 }
 0x486   :  { %923 = vsyncpa [#allocation4], 1 }
 0x487   :  { %924 = vsyncpa [#allocation5], 1 }

</bundles_post_ra>
